<compile_context>
chip_gen: v7x
topology: tpu7x:2x2x1
jax: 0.10.0
libtpu: 0.0.40
codegen_flags: <defaults>
</compile_context>

<pallas_src>
import functools

import jax
import jax.numpy as jnp
import numpy as np
from jax.experimental import pallas as pl
from jax.experimental.pallas import tpu as pltpu


_MAX_DMA_CHUNKS = 4             # 2-4 concurrent DMAs saturate HBM on all gens.
_MIN_BYTES_PER_CHUNK = 128 * 1024   # don't bother splitting tiny arrays.


def _row_splits(num_rows: int, total_bytes: int):
    """Split [0, num_rows) into <= _MAX_DMA_CHUNKS contiguous row chunks."""
    if num_rows <= 1 or total_bytes < 2 * _MIN_BYTES_PER_CHUNK:
        return ((0, num_rows),)
    n = min(
        _MAX_DMA_CHUNKS,
        num_rows,
        max(1, total_bytes // _MIN_BYTES_PER_CHUNK),
    )
    bounds = np.linspace(0, num_rows, n + 1).astype(np.int64)
    return tuple(
        (int(bounds[i]), int(bounds[i + 1]))
        for i in range(n)
        if int(bounds[i + 1]) > int(bounds[i])
    )


def _dma_identity_kernel(x_hbm, o_hbm, *, row_splits):
    """Copy x -> o with a few big concurrent HBM->HBM DMAs (no VMEM staging)."""

    def scoped(sems):
        copies = []
        for idx, span in enumerate(row_splits):
            if span is None:  # 0-d input: copy the whole buffer.
                src, dst = x_hbm, o_hbm
            else:
                lo, hi = span  # static slice -> zero-cost Ref view.
                src, dst = x_hbm.at[lo:hi], o_hbm.at[lo:hi]
            cp = pltpu.make_async_copy(src, dst, sems.at[idx])
            cp.start()
            copies.append(cp)
        # Issue everything first, then wait: the chunks run concurrently.
        for cp in copies:
            cp.wait()

    pl.run_scoped(scoped, pltpu.SemaphoreType.DMA((len(row_splits),)))


def _wide_layer_dma_copy(wide_feature: jax.Array) -> jax.Array:
    nbytes = int(wide_feature.size) * jnp.dtype(wide_feature.dtype).itemsize
    if wide_feature.ndim == 0:
        splits = (None,)
    else:
        splits = _row_splits(int(wide_feature.shape[0]), nbytes)

    kernel = functools.partial(_dma_identity_kernel, row_splits=splits)
    return pl.pallas_call(
        kernel,
        out_shape=jax.ShapeDtypeStruct(wide_feature.shape, wide_feature.dtype),
        in_specs=[pl.BlockSpec(memory_space=pl.ANY)],
        out_specs=pl.BlockSpec(memory_space=pl.ANY),
        cost_estimate=pl.CostEstimate(
            flops=0, transcendentals=0, bytes_accessed=2 * nbytes
        ),
    )(wide_feature)


def wide_layer(wide_feature: jax.Array, *, zero_copy: bool = False) -> jax.Array:
    """Forward of WideLayer (identity): returns `wide_feature` unchanged.

    Default: a distinct output buffer produced by a direct HBM->HBM DMA
    kernel (roofline-bound copy, no VMEM staging, no per-step overhead).
    zero_copy=True: return the input array itself (true identity, no launch).
    """
    if zero_copy:
        return wide_feature
    return _wide_layer_dma_copy(wide_feature)


if __name__ == "__main__":
    key = jax.random.PRNGKey(0)
    k0, k1, k2 = jax.random.split(key, 3)

    # Shape implied by the module: wide_feature is (batch, wide_dim).
    x = jax.random.normal(k0, (8, 128), dtype=jnp.float32)
    y = jax.block_until_ready(wide_layer(x))
    assert y.shape == x.shape and y.dtype == x.dtype
    assert np.array_equal(np.asarray(y), np.asarray(x))

    # Larger array -> exercises the multi-chunk (4 concurrent DMA) path.
    xb = jax.random.normal(k1, (512, 512), dtype=jnp.float32)
    yb = jax.block_until_ready(wide_layer(xb))
    assert yb.shape == xb.shape and yb.dtype == xb.dtype
    assert np.array_equal(np.asarray(yb), np.asarray(xb))

    # Narrow / non-128-aligned feature dim + bf16: fine on the DMA path since
    # nothing is staged through VMEM (no lane-alignment requirement).
    xc = jax.random.normal(k2, (16, 100), dtype=jnp.bfloat16)
    yc = jax.block_until_ready(wide_layer(xc))
    assert yc.shape == xc.shape and yc.dtype == xc.dtype
    assert bool(jnp.array_equal(yc, xc))

    # True zero-copy identity (no pallas_call, no launch overhead).
    y0 = wide_layer(x, zero_copy=True)
    assert y0 is x

    print("KERNEL_OK")
</pallas_src>

<mosaic_0001>
module attributes {stable_mosaic.version = 11 : i64} {
  func.func @_dma_identity_kernel(%arg0: memref<8x128xf32, #tpu.memory_space<any>>, %arg1: memref<8x128xf32, #tpu.memory_space<any>>) attributes {dimension_semantics = [], scalar_prefetch = 0 : i64, scratch_operands = 0 : i64, tpu.core_type = #tpu.core_type<tc>} {
    "tpu.region"() ({
      %0 = tpu.sem_alloc : memref<1x!tpu.dma_semaphore, #tpu.memory_space<semaphore_mem>>
      %c0_i32 = arith.constant 0 : i32
      %c0_i32_0 = arith.constant 0 : i32
      %c0_i32_1 = arith.constant 0 : i32
      %1 = tpu.memref_slice %arg0[%c0_i32_0, %c0_i32_1] : memref<8x128xf32, #tpu.memory_space<any>> -> memref<8x128xf32, #tpu.memory_space<any>>
      %c0_i32_2 = arith.constant 0 : i32
      %c0_i32_3 = arith.constant 0 : i32
      %2 = tpu.memref_slice %arg1[%c0_i32_2, %c0_i32_3] : memref<8x128xf32, #tpu.memory_space<any>> -> memref<8x128xf32, #tpu.memory_space<any>>
      %3 = tpu.memref_slice %0[%c0_i32] : memref<1x!tpu.dma_semaphore, #tpu.memory_space<semaphore_mem>> -> memref<1x!tpu.dma_semaphore, #tpu.memory_space<semaphore_mem>>
      %4 = tpu.memref_squeeze %3 : memref<1x!tpu.dma_semaphore, #tpu.memory_space<semaphore_mem>> -> memref<!tpu.dma_semaphore, #tpu.memory_space<semaphore_mem>>
      tpu.enqueue_dma source(%1 : memref<8x128xf32, #tpu.memory_space<any>>) target(%2 : memref<8x128xf32, #tpu.memory_space<any>>) target_semaphore(%4 : memref<!tpu.dma_semaphore, #tpu.memory_space<semaphore_mem>>)
      %c0_i32_4 = arith.constant 0 : i32
      %c0_i32_5 = arith.constant 0 : i32
      %c0_i32_6 = arith.constant 0 : i32
      %5 = tpu.memref_slice %arg0[%c0_i32_5, %c0_i32_6] : memref<8x128xf32, #tpu.memory_space<any>> -> memref<8x128xf32, #tpu.memory_space<any>>
      %c0_i32_7 = arith.constant 0 : i32
      %c0_i32_8 = arith.constant 0 : i32
      %6 = tpu.memref_slice %arg1[%c0_i32_7, %c0_i32_8] : memref<8x128xf32, #tpu.memory_space<any>> -> memref<8x128xf32, #tpu.memory_space<any>>
      %7 = tpu.memref_slice %0[%c0_i32_4] : memref<1x!tpu.dma_semaphore, #tpu.memory_space<semaphore_mem>> -> memref<1x!tpu.dma_semaphore, #tpu.memory_space<semaphore_mem>>
      %8 = tpu.memref_squeeze %7 : memref<1x!tpu.dma_semaphore, #tpu.memory_space<semaphore_mem>> -> memref<!tpu.dma_semaphore, #tpu.memory_space<semaphore_mem>>
      tpu.wait_dma2 semaphore(%8 : memref<!tpu.dma_semaphore, #tpu.memory_space<semaphore_mem>>) src(%5 : memref<8x128xf32, #tpu.memory_space<any>>) dst(%6 : memref<8x128xf32, #tpu.memory_space<any>>)
      tpu.yield
    }) : () -> ()
    return
  }
}

</mosaic_0001>

<bundles_post_ra>
// kernel: tpu_custom_call.1
= control target key start
LH: loop header
LB: loop body
LE: loop exit
PB: predicated region body
PF: predicated region fallthrough
CT: control target
= control target key end

     0   :  { %s27_s6 = smov [#allocation2]   ;;  %s28_s7 = smov [#allocation3]   ;;  %s46_s0 = inlined_call_operand.hbm [shape: f32[8,128], index: 0, kind: input, shape index: {}]   ;;  %s47_s1 = inlined_call_operand.hbm [shape: f32[8,128], index: 1, kind: output, shape index: {}]  }
   0x1   :  { %s29_s8 = smov 0  }
   0x2   :  { %18 = dma.general %s46_s0, 128, %s47_s1, %s27_s6, %s28_s7, [#allocation4], %s29_s8, 0  }
   0x3   :  { %25 = dma.done.wait [#allocation2], 128 }
   0x4   :  { %26 = vsyncadd [#allocation2], 4294967168 }

</bundles_post_ra>
